<compile_context>
chip_gen: v7x
topology: tpu7x:2x2x1
jax: 0.10.0
libtpu: 0.0.40
codegen_flags: <defaults>
</compile_context>

<pallas_src>
import functools
import math

import jax
import jax.numpy as jnp
from jax.experimental import pallas as pl
from jax.experimental.pallas import tpu as pltpu


def _locked_dropout_kernel(x_ref, m_ref, o_ref):
    # Pure elementwise, HBM-bandwidth bound:
    #   x tile (T_TILE, B, H) * mask (1, B, H) broadcast over the T axis.
    o_ref[...] = (x_ref[...] * m_ref[...]).astype(o_ref.dtype)


def _pick_t_tile(L, B, H, itemsize, target_bytes=1 << 20):
    """Largest divisor of L whose (tile, B, H) block stays under target_bytes.

    ~1 MiB per block keeps double-buffered in+out (~4x block) comfortably
    inside v5e's 16 MiB scoped-VMEM default while being big enough to sit
    near the HBM roofline on v6e/v7x.
    """
    row_bytes = B * H * itemsize
    cap = max(1, target_bytes // max(1, row_bytes))
    best = 1
    for d in range(1, L + 1):
        if L % d == 0 and d <= cap:
            best = d
    return best


def _locked_dropout_3d(x, mask):
    """x: (L, B, H), mask: (1, B, H) in x.dtype. Returns mask * x."""
    L, B, H = x.shape
    t_tile = _pick_t_tile(L, B, H, x.dtype.itemsize)
    grid = (L // t_tile,)

    return pl.pallas_call(
        _locked_dropout_kernel,
        out_shape=jax.ShapeDtypeStruct((L, B, H), x.dtype),
        grid_spec=pl.GridSpec(
            grid=grid,
            in_specs=[
                pl.BlockSpec((t_tile, B, H), lambda t: (t, 0, 0)),
                pl.BlockSpec((1, B, H), lambda t: (0, 0, 0)),
            ],
            out_specs=pl.BlockSpec((t_tile, B, H), lambda t: (t, 0, 0)),
        ),
        compiler_params=pltpu.CompilerParams(
            # No cross-step state: every tile is independent.
            dimension_semantics=("parallel",),
        ),
    )(x, mask)


def locked_dropout(x, key, dropout=0.5, training=True, avg_mode=False):
    """JAX/Pallas equivalent of LockedDropout.forward.

    Non-avg_mode: x is (T, B, H); mask of shape (1, B, H) is shared across T.
    avg_mode:     x is (N, T, B, H) (a stack of (T, B, H) tensors); the same
                  (1, B, H) mask is shared across both N and T, matching
                  torch.stack([mask * out for out in x]).
    `dropout` must be a concrete Python float (as in the PyTorch module).
    """
    if not training or not dropout:
        return x

    keep_prob = 1.0 - float(dropout)

    if avg_mode:
        N, T, B, H = x.shape
        x_flat = x.reshape(N * T, B, H)
    else:
        T, B, H = x.shape
        x_flat = x

    # Mask sampled once in plain JAX (no in-kernel PRNG needed), kept in
    # x.dtype so bf16 inputs avoid f32 up/down-casts on the hot path.
    keep = jax.random.bernoulli(key, p=keep_prob, shape=(1, B, H))
    mask = keep.astype(x.dtype) * jnp.asarray(1.0 / keep_prob, dtype=x.dtype)

    out = _locked_dropout_3d(x_flat, mask)
    if avg_mode:
        out = out.reshape(N, T, B, H)
    return out


if __name__ == "__main__":
    key = jax.random.PRNGKey(0)
    xkey, mkey = jax.random.split(key)

    T, B, H = 8, 4, 128  # seq=8, batch=4, hidden=128
    x = jax.random.normal(xkey, (T, B, H), dtype=jnp.float32)

    dropout = 0.5
    out = locked_dropout(x, mkey, dropout=dropout, training=True)
    out = jax.block_until_ready(out)

    # Sanity checks of the "locked" semantics:
    #  - every kept element is scaled by exactly 1/(1-p)
    #  - the keep/drop pattern is identical for all time steps
    ratio = out / x
    scale = 1.0 / (1.0 - dropout)
    ok_vals = jnp.all(
        jnp.logical_or(jnp.isclose(ratio, 0.0, atol=1e-5),
                       jnp.isclose(ratio, scale, atol=1e-4)))
    ok_locked = jnp.all(jnp.isclose(ratio, ratio[0:1], atol=1e-4))

    # eval / dropout=0 path returns input unchanged
    out_eval = jax.block_until_ready(
        locked_dropout(x, mkey, dropout=dropout, training=False))
    ok_eval = jnp.array_equal(out_eval, x)

    # avg_mode: same mask shared across the stack axis as well
    N = 3
    x4 = jax.random.normal(xkey, (N, T, B, H), dtype=jnp.float32)
    out4 = jax.block_until_ready(
        locked_dropout(x4, mkey, dropout=dropout, training=True, avg_mode=True))
    ratio4 = (out4 / x4).reshape(N * T, B, H)
    ok_avg = jnp.all(jnp.isclose(ratio4, ratio4[0:1], atol=1e-4))

    assert bool(ok_vals) and bool(ok_locked) and bool(ok_eval) and bool(ok_avg)
    print("KERNEL_OK")
</pallas_src>

<mosaic_0001>
module attributes {stable_mosaic.version = 11 : i64} {
  func.func @_locked_dropout_kernel(%arg0: i32, %arg1: memref<8x4x128xf32, #tpu.memory_space<vmem>>, %arg2: memref<1x4x128xf32, #tpu.memory_space<vmem>>, %arg3: memref<8x4x128xf32, #tpu.memory_space<vmem>>) attributes {dimension_semantics = [#tpu.dimension_semantics<parallel>], iteration_bounds = array<i64: 1>, scalar_prefetch = 0 : i64, scratch_operands = 0 : i64, tpu.core_type = #tpu.core_type<tc>, window_params = [{transform_indices = @transform_0, window_bounds = array<i64: 8, 4, 128>}, {pipeline_mode = #tpu.pipeline_mode<synchronous>, transform_indices = @transform_1, window_bounds = array<i64: 1, 4, 128>}, {transform_indices = @transform_2, window_bounds = array<i64: 8, 4, 128>}]} {
    %c0 = arith.constant 0 : index
    %c0_0 = arith.constant 0 : index
    %c0_1 = arith.constant 0 : index
    %0 = vector.load %arg1[%c0, %c0_0, %c0_1] : memref<8x4x128xf32, #tpu.memory_space<vmem>>, vector<8x4x128xf32>
    %c0_2 = arith.constant 0 : index
    %c0_3 = arith.constant 0 : index
    %c0_4 = arith.constant 0 : index
    %1 = vector.load %arg2[%c0_2, %c0_3, %c0_4] : memref<1x4x128xf32, #tpu.memory_space<vmem>>, vector<1x4x128xf32>
    %2 = vector.broadcast %1 : vector<1x4x128xf32> to vector<8x4x128xf32>
    %3 = arith.mulf %0, %2 : vector<8x4x128xf32>
    %c0_5 = arith.constant 0 : index
    %c0_6 = arith.constant 0 : index
    %c0_7 = arith.constant 0 : index
    %4 = vector.load %arg3[%c0_5, %c0_6, %c0_7] : memref<8x4x128xf32, #tpu.memory_space<vmem>>, vector<8x4x128xf32>
    tpu.vector_store %arg3[%c0_5, %c0_6, %c0_7], %3 {strides = array<i32>} : memref<8x4x128xf32, #tpu.memory_space<vmem>>, vector<8x4x128xf32>,
    return
  }
  func.func @transform_0(%arg0: i32) -> (i32, i32, i32) {
    %c0_i32 = arith.constant 0 : i32
    %c0_i32_0 = arith.constant 0 : i32
    %c0_i32_1 = arith.constant 0 : i32
    return %arg0, %c0_i32, %c0_i32_0 : i32, i32, i32
  }
  func.func @transform_1(%arg0: i32) -> (i32, i32, i32) {
    %c0_i32 = arith.constant 0 : i32
    %c0_i32_0 = arith.constant 0 : i32
    %c0_i32_1 = arith.constant 0 : i32
    %c0_i32_2 = arith.constant 0 : i32
    return %c0_i32, %c0_i32_0, %c0_i32_1 : i32, i32, i32
  }
  func.func @transform_2(%arg0: i32) -> (i32, i32, i32) {
    %c0_i32 = arith.constant 0 : i32
    %c0_i32_0 = arith.constant 0 : i32
    %c0_i32_1 = arith.constant 0 : i32
    return %arg0, %c0_i32, %c0_i32_0 : i32, i32, i32
  }
}

</mosaic_0001>

<bundles_post_ra>
// kernel: tpu_custom_call.1
= control target key start
LH: loop header
LB: loop body
LE: loop exit
PB: predicated region body
PF: predicated region fallthrough
CT: control target
= control target key end

     0   :  { %7 = vsyncpa [#allocation3], 0  ;;  %s220_s0 = inlined_call_operand.hbm [shape: f32[8,4,128], index: 0, kind: input, shape index: {}]   ;;  %s221_s1 = inlined_call_operand.hbm [shape: f32[1,4,128], index: 1, kind: input, shape index: {}]   ;;  %s222_s2 = inlined_call_operand.hbm [shape: f32[8,4,128], index: 2, kind: output, shape index: {}]  }
   0x1   :  { %8 = vsyncpa [#allocation6], 0 }
   0x2   :  { %9 = vsyncpa [#allocation4], 0  ;;  %s158_s9 = smov [#allocation2]   ;;  %s86_s13 = scalar_lea.hbm %s220_s0, 512 }
   0x3   :  { %s15_s10 = sshll.u32 %s158_s9, 4  ;;  %p87_p0 = scmp.ne.s32.totalorder %s220_s0, %s86_s13  ;;  %s16_s10 = int_to_ptr.vmem [resolvable:$true] %s15_s10 }
   0x4   :  { %p90_p1 = scmp.lt.u32.totalorder %s86_s13, %s220_s0 }
   0x6   :  { %p92_p2 = pnand %p90_p1, %p87_p0 }
   0x8   :  { %95 = shalt.err (!%p92_p2)
}
   0x9   :  { %s96_s18 = scalar_lea.vmem %s16_s10, 512  ;;  %p101_p4 = scmp.lt.s32.totalorder %s16_s10, %s16_s10 }
   0xa   :  { %p97_p3 = scmp.ne.s32.totalorder %s16_s10, %s96_s18  ;;  %p102_p5 = scmp.lt.s32.totalorder %s96_s18, %s96_s18 }
   0xc   :  { %p103_p6 = por %p102_p5, %p101_p4 }
   0xe   :  { %p104_p7 = pnand %p103_p6, %p97_p3 }
  0x10   :  { %107 = shalt.err (!%p104_p7)
}
  0x11   :  { %s159_s19 = smov 64   ;;  %s160_s20 = smov 4  }
  0x12   :  { %21 = dma.hbm_to_vmem [thread:$0]  %s220_s0, 512, %s16_s10, [#allocation3], %s159_s19, %s159_s19, %s160_s20  }
  0x13   :  { %s161_s23 = smov [#allocation5]   ;;  %s108_s27 = scalar_lea.hbm %s221_s1, 64 }
  0x14   :  { %s28_s24 = sshll.u32 %s161_s23, 4  ;;  %p109_p8 = scmp.ne.s32.totalorder %s221_s1, %s108_s27  ;;  %s29_s24 = int_to_ptr.vmem [resolvable:$true] %s28_s24 }
  0x15   :  { %p112_p9 = scmp.lt.u32.totalorder %s108_s27, %s221_s1 }
  0x17   :  { %p114_p10 = pnand %p112_p9, %p109_p8 }
  0x19   :  { %117 = shalt.err (!%p114_p10)
}
  0x1a   :  { %s118_s4 = scalar_lea.vmem %s29_s24, 64  ;;  %p123_p12 = scmp.lt.s32.totalorder %s29_s24, %s29_s24 }
  0x1b   :  { %p119_p11 = scmp.ne.s32.totalorder %s29_s24, %s118_s4  ;;  %p124_p13 = scmp.lt.s32.totalorder %s118_s4, %s118_s4 }
  0x1d   :  { %p125_p0 = por %p124_p13, %p123_p12 }
  0x1f   :  { %p126_p1 = pnand %p125_p0, %p119_p11 }
  0x21   :  { %129 = shalt.err (!%p126_p1)
}
  0x22   :  { %31 = dma.hbm_to_vmem [thread:$0]  %s221_s1, 64, %s29_s24, [#allocation6]  }
  0x23   :  { %152 = dma.done.wait [#allocation3], 512  }
  0x24   :  { %153 = vsyncadd [#allocation3], 4294966784 }
  0x25   :  { %154 = dma.done.wait [#allocation6], 64  }
  0x26   :  { %155 = vsyncadd [#allocation6], 4294967232  ;;  %s162_s6 = smov [#allocation7]   ;;  %v38_v0 = vld [vmem:[#allocation2] sm:$0xf] }
  0x27   :  { %s68_s7 = sshll.u32 %s162_s6, 4  ;;  %v46_v1 = vld [vmem:[#allocation5] sm:$0xf]  ;;  %v39_v2 = vld [vmem:[#allocation2 + $0x4] sm:$0xf]  ;;  %s69_s7 = int_to_ptr.vmem [resolvable:$true] %s68_s7 }
  0x28   :  { %v47_v3 = vmul.f32 %v46_v1, %v38_v0  ;;  %v48_v4 = vmul.f32 %v46_v1, %v39_v2  ;;  %v40_v5 = vld [vmem:[#allocation2 + $0x8] sm:$0xf]  ;;  %v41_v6 = vld [vmem:[#allocation2 + $0xc] sm:$0xf]  ;;  %v42_v7 = vld [vmem:[#allocation2 + $0x10] sm:$0xf]  ;;  %p135_p3 = scmp.lt.s32.totalorder %s69_s7, %s69_s7 }
  0x29   :  { %v49_v8 = vmul.f32 %v46_v1, %v40_v5  ;;  %v50_v9 = vmul.f32 %v46_v1, %v41_v6  ;;  %v51_v10 = vmul.f32 %v46_v1, %v42_v7  ;;  %v43_v11 = vld [vmem:[#allocation2 + $0x14] sm:$0xf]  ;;  %v44_v12 = vld [vmem:[#allocation2 + $0x18] sm:$0xf]  ;;  %v45_v13 = vld [vmem:[#allocation2 + $0x1c] sm:$0xf] }
  0x2a   :  { %55 = vst [vmem:[#allocation7] sm:$0xf] %v47_v3  ;;  %56 = vst [vmem:[#allocation7 + $0x4] sm:$0xf] %v48_v4  ;;  %v52_v14 = vmul.f32 %v46_v1, %v43_v11  ;;  %v53_v15 = vmul.f32 %v46_v1, %v44_v12  ;;  %v54_v16 = vmul.f32 %v46_v1, %v45_v13  ;;  %s130_s1 = scalar_lea.vmem %s69_s7, 512 }
  0x2b   :  { %57 = vst [vmem:[#allocation7 + $0x8] sm:$0xf] %v49_v8  ;;  %58 = vst [vmem:[#allocation7 + $0xc] sm:$0xf] %v50_v9  ;;  %p131_p2 = scmp.ne.s32.totalorder %s69_s7, %s130_s1  ;;  %p136_p4 = scmp.lt.s32.totalorder %s130_s1, %s130_s1 }
  0x2c   :  { %59 = vst [vmem:[#allocation7 + $0x10] sm:$0xf] %v51_v10  ;;  %60 = vst [vmem:[#allocation7 + $0x14] sm:$0xf] %v52_v14 }
  0x2d   :  { %61 = vst [vmem:[#allocation7 + $0x18] sm:$0xf] %v53_v15  ;;  %62 = vst [vmem:[#allocation7 + $0x1c] sm:$0xf] %v54_v16  ;;  %p137_p5 = por %p136_p4, %p135_p3 }
  0x2f   :  { %p138_p6 = pnand %p137_p5, %p131_p2 }
  0x31   :  { %141 = shalt.err (!%p138_p6)
}
  0x32   :  { %s142_s10 = scalar_lea.hbm %s222_s2, 512 }
  0x33   :  { %p143_p7 = scmp.ne.s32.totalorder %s222_s2, %s142_s10  ;;  %p146_p8 = scmp.lt.u32.totalorder %s142_s10, %s222_s2 }
  0x35   :  { %p148_p9 = pnand %p146_p8, %p143_p7 }
  0x37   :  { %151 = shalt.err (!%p148_p9)
}
  0x38   :  { %74 = dma.vmem_to_hbm [thread:$0]  %s69_s7, 512, %s222_s2, [#allocation4], %s159_s19, %s159_s19, %s160_s20  }
  0x39   :  { %156 = dma.done.wait [#allocation4], 512  }
  0x3a   :  { %157 = vsyncadd [#allocation4], 4294966784 }
  0x3b   :  { %78 = vsyncpa [#allocation3], 1 }
  0x3c   :  { %79 = vsyncpa [#allocation6], 1 }
  0x3d   :  { %80 = vsyncpa [#allocation4], 1 }

</bundles_post_ra>
